<compile_context>
chip_gen: v7x
topology: tpu7x:2x2x1
jax: 0.10.0
libtpu: 0.0.40
codegen_flags: <defaults>
</compile_context>

<pallas_src>
import jax
import jax.numpy as jnp
from jax import lax
from jax.experimental import pallas as pl
from jax.experimental.pallas import tpu as pltpu

HEAD = 12    # fixed in the module
LANE = 128   # lane-dense (padded) output width


# ----------------------------- kernel helpers ----------------------------- #
def _head_reduce(p, m_dim):
    """p: (rows, HEAD*m_dim) head-major ('b (h c)').  Returns sum over heads."""
    mh = p.shape[-1]
    if mh % 128 == 0 and 128 % m_dim == 0:
        # Full-vreg (128-lane) chunk accumulation, then fold the 128//m_dim
        # sub-blocks of the accumulated chunk -- exact f32, minimal slicing.
        acc = p[:, 0:128]
        for k in range(1, mh // 128):
            acc = acc + p[:, k * 128:(k + 1) * 128]
        m = acc[:, 0:m_dim]
        for s in range(1, 128 // m_dim):
            m = m + acc[:, s * m_dim:(s + 1) * m_dim]
        return m
    # generic fallback: per-head slices
    m = p[:, 0:m_dim]
    for h in range(1, HEAD):
        m = m + p[:, h * m_dim:(h + 1) * m_dim]
    return m


def _normalize_project(m, wout, bout):
    """Signed sqrt, L2 normalize (F.normalize p=2, eps=1e-12), out projection.

    wout is (m_dim, 128) zero-padded, bout is (1, 128) zero-padded, so the result
    is a lane-dense (rows, 128) slab (padded lanes are exactly zero)."""
    m = jnp.sqrt(jnp.maximum(m, 0.0)) - jnp.sqrt(jnp.maximum(-m, 0.0))
    # divide by max(||m||, 1e-12)  ==  multiply by rsqrt(max(||m||^2, 1e-24));
    # rsqrt runs on the otherwise-idle EUP slot.
    ssq = jnp.sum(m * m, axis=-1, keepdims=True)
    m = m * lax.rsqrt(jnp.maximum(ssq, 1e-24))
    return jnp.dot(m, wout, preferred_element_type=jnp.float32) + bout


def _q2_v2(q, v, slab_a_ref):
    """Fused reduce_* + linear_*:  q2 = q @ (wrq@wlq) + blq,  v2 = v @ (wrv@wlv) + blv.

    slab_a layout (rows x lanes): rows [0:D] = [Wq | Wv], row D = [blq | blv].
    All slice offsets are multiples of 8 (sublane) / 128 (lane) -> no relayouts."""
    d = q.shape[1]
    hm = slab_a_ref.shape[1] // 2
    wq = slab_a_ref[0:d, 0:hm]
    wv = slab_a_ref[0:d, hm:2 * hm]
    bq = slab_a_ref[d:d + 1, 0:hm]
    bv = slab_a_ref[d:d + 1, hm:2 * hm]
    # TODO(synk): F.dropout(p=0.1) in the reference runs with training=True and is
    # stochastic (PyTorch RNG); treated as identity here for determinism -- this is
    # also what makes the wrq@wlq / wrv@wlv weight fusion exact.
    q2 = jnp.dot(q, wq, preferred_element_type=jnp.float32) + bq
    v2 = jnp.dot(v, wv, preferred_element_type=jnp.float32) + bv
    return q2, v2


# ----------------------------- Pallas kernels ------------------------------ #
def _mutan_compose_kernel(q_ref, v_ref, slab_a_ref, slab_b_ref, out_ref):
    # q_ref/v_ref : (bs, D)
    # slab_a      : (D+1, 2*HEAD*M)   fused weights + biases
    # slab_b      : (M+1, 128)        wout (lane-padded) + bout (last row)
    # out_ref     : (bs, 128)         lane-dense; wrapper slices [:, :D]
    m_dim = slab_b_ref.shape[0] - 1
    q = q_ref[...].astype(jnp.float32)
    v = v_ref[...].astype(jnp.float32)
    q2, v2 = _q2_v2(q, v, slab_a_ref)
    p = q2 * v2                                   # one full-width VPU multiply
    m = _head_reduce(p, m_dim)
    z = _normalize_project(m, slab_b_ref[0:m_dim, :],
                           slab_b_ref[m_dim:m_dim + 1, :])
    out_ref[...] = z.astype(out_ref.dtype)        # single unmasked lane-dense store


def _mutan_pairwise_kernel(img_ref, txt_ref, slab_a_ref, slab_b_ref, out_ref, m_scr):
    # Fused cell_id != 0 path: out row (i*bs + j) = compose(image[j], text[i]).
    # q2/v2 are computed ONCE; the i-loop only builds the head-reduced m-blocks into
    # a VMEM scratch; the whole epilogue (signed sqrt, normalize, wout projection,
    # store) then runs once on the (bs*bs, m_dim) slab.
    bs = img_ref.shape[0]
    m_dim = slab_b_ref.shape[0] - 1
    q = img_ref[...].astype(jnp.float32)
    v = txt_ref[...].astype(jnp.float32)
    q2, v2 = _q2_v2(q, v, slab_a_ref)
    for i in range(bs):                           # static unroll (bs is small)
        p = q2 * v2[i:i + 1, :]                   # broadcast text row i
        m_scr[i * bs:(i + 1) * bs, :] = _head_reduce(p, m_dim)
    z = _normalize_project(m_scr[...],            # ONE dot (64,64)@(64,128), ONE epilogue
                           slab_b_ref[0:m_dim, :],
                           slab_b_ref[m_dim:m_dim + 1, :])
    out_ref[...] = z.astype(out_ref.dtype)        # single unmasked lane-dense store


# ------------------------------- wrappers --------------------------------- #
_VMEM = pl.BlockSpec(memory_space=pltpu.MemorySpace.VMEM)


def pack_params(params):
    """Fuse reduce_*@linear_* and pack all 8 weight/bias operands into 2 f32 slabs."""
    wq = params["wrq"] @ params["wlq"]            # (D, HEAD*M)
    wv = params["wrv"] @ params["wlv"]            # (D, HEAD*M)
    slab_a = jnp.concatenate(
        [jnp.concatenate([wq, wv], axis=1),
         jnp.concatenate([params["blq"], params["blv"]], axis=1)],
        axis=0).astype(jnp.float32)               # (D+1, 2*HEAD*M)

    m_dim, d = params["wout"].shape
    wout_pad = jnp.zeros((m_dim, LANE), jnp.float32).at[:, :d].set(params["wout"])
    bout_pad = jnp.zeros((1, LANE), jnp.float32).at[:, :d].set(params["bout"])
    slab_b = jnp.concatenate([wout_pad, bout_pad], axis=0)   # (M+1, 128)
    return slab_a, slab_b


def _bytes(*xs):
    return int(sum(int(x.size) * x.dtype.itemsize for x in xs))


def mutan_compose(q, v, slab_a, slab_b):
    """compose(q, v): q, v are (bs, D); returns (bs, D)."""
    bs, d = q.shape
    hm = slab_a.shape[1] // 2
    m_dim = slab_b.shape[0] - 1
    cost = pl.CostEstimate(
        flops=2 * bs * d * 2 * hm + 2 * bs * hm + 2 * bs * m_dim * LANE,
        transcendentals=3 * bs * m_dim,
        bytes_accessed=_bytes(q, v, slab_a, slab_b) + bs * LANE * 4)
    out = pl.pallas_call(
        _mutan_compose_kernel,
        out_shape=jax.ShapeDtypeStruct((bs, LANE), jnp.float32),  # lane-dense
        in_specs=[_VMEM] * 4,
        out_specs=_VMEM,
        cost_estimate=cost,
    )(q, v, slab_a, slab_b)
    return out[:, :d]                              # free layout plumbing in the wrapper


def mutan_pairwise(image_features, text_features, slab_a, slab_b):
    """cell_id != 0 path, fused: returns (bs, bs, D) with out[i, j] =
    compose(image_features[j], text_features[i])."""
    bs, d = image_features.shape
    hm = slab_a.shape[1] // 2
    m_dim = slab_b.shape[0] - 1
    rows = bs * bs
    cost = pl.CostEstimate(
        flops=2 * bs * d * 2 * hm + 2 * rows * hm + 2 * rows * m_dim * LANE,
        transcendentals=3 * rows * m_dim,
        bytes_accessed=_bytes(image_features, text_features, slab_a, slab_b)
                       + rows * LANE * 4)
    flat = pl.pallas_call(
        _mutan_pairwise_kernel,
        out_shape=jax.ShapeDtypeStruct((rows, LANE), jnp.float32),  # lane-dense slab
        in_specs=[_VMEM] * 4,
        out_specs=_VMEM,
        scratch_shapes=[pltpu.VMEM((rows, m_dim), jnp.float32)],
        cost_estimate=cost,
    )(image_features, text_features, slab_a, slab_b)
    return flat[:, :d].reshape(bs, bs, d)


def mutan_forward(image_features, text_features, cell_id, slab_a, slab_b):
    """Mutan.forward: cell_id == 0 -> (bs, D); cell_id != 0 -> (bs, bs, D)."""
    if cell_id != 0:
        return mutan_pairwise(image_features, text_features, slab_a, slab_b)
    return mutan_compose(image_features, text_features, slab_a, slab_b)


# -------------------------- deterministic init ---------------------------- #
def init_params(key, embed_dim):
    d = embed_dim
    m = 2 * d
    ks = jax.random.split(key, 8)

    def u(k, shape, fan_in):
        bound = 1.0 / (fan_in ** 0.5)
        return jax.random.uniform(k, shape, jnp.float32, -bound, bound)

    # stored pre-transposed as (in, out)
    return {
        "wrq":  u(ks[0], (d, m), d),
        "wrv":  u(ks[1], (d, m), d),
        "wlq":  u(ks[2], (m, m * HEAD), m),
        "blq":  u(ks[3], (1, m * HEAD), m),
        "wlv":  u(ks[4], (m, m * HEAD), m),
        "blv":  u(ks[5], (1, m * HEAD), m),
        "wout": u(ks[6], (m, d), m),
        "bout": u(ks[7], (1, d), m),
    }


# ----------------------------- pure-JAX refs -------------------------------- #
def mutan_compose_ref(q, v, p):
    q1 = q @ p["wrq"]
    v1 = v @ p["wrv"]
    q2 = q1 @ p["wlq"] + p["blq"]
    v2 = v1 @ p["wlv"] + p["blv"]
    bs, m_dim = q1.shape
    q3 = q2.reshape(bs, HEAD, m_dim)
    v3 = v2.reshape(bs, HEAD, m_dim)
    mm = jnp.sum(q3 * v3, axis=-2)
    mm = jnp.sqrt(jnp.maximum(mm, 0.0)) - jnp.sqrt(jnp.maximum(-mm, 0.0))
    mm = mm / jnp.maximum(jnp.linalg.norm(mm, axis=-1, keepdims=True), 1e-12)
    return mm @ p["wout"] + p["bout"]


def mutan_pairwise_ref(image_features, text_features, p):
    bs = image_features.shape[0]
    rows = []
    for i in range(bs):
        v_i = jnp.broadcast_to(text_features[i][None, :], image_features.shape)
        rows.append(mutan_compose_ref(image_features, v_i, p))
    return jnp.stack(rows, axis=0)


# --------------------------------- main ------------------------------------ #
if __name__ == "__main__":
    bs, embed_dim = 8, 32  # opt.batch_size=8, opt.embed_dim=32 -> m_dim=64

    key = jax.random.PRNGKey(0)
    k_img, k_txt, k_par = jax.random.split(key, 3)
    image_features = jax.random.normal(k_img, (bs, embed_dim), jnp.float32)
    text_features = jax.random.normal(k_txt, (bs, embed_dim), jnp.float32)
    params = init_params(k_par, embed_dim)
    slab_a, slab_b = pack_params(params)          # fused + packed weights (f32)

    # cell_id == 0 path (single compose)
    out0 = jax.block_until_ready(
        mutan_forward(image_features, text_features, 0, slab_a, slab_b))
    ref0 = mutan_compose_ref(image_features, text_features, params)
    assert out0.shape == (bs, embed_dim)
    assert jnp.allclose(out0, ref0, atol=1e-4, rtol=1e-4)

    # cell_id != 0 path (fused pairwise composition, one pallas_call)
    out1 = jax.block_until_ready(
        mutan_forward(image_features, text_features, 1, slab_a, slab_b))
    ref1 = mutan_pairwise_ref(image_features, text_features, params)
    assert out1.shape == (bs, bs, embed_dim)
    assert jnp.allclose(out1, ref1, atol=1e-4, rtol=1e-4)

    print("KERNEL_OK")
</pallas_src>

<mosaic_0001>
module attributes {stable_mosaic.version = 11 : i64} {
  func.func @_mutan_compose_kernel(%arg0: memref<8x32xf32, #tpu.memory_space<vmem>>, %arg1: memref<8x32xf32, #tpu.memory_space<vmem>>, %arg2: memref<33x1536xf32, #tpu.memory_space<vmem>>, %arg3: memref<65x128xf32, #tpu.memory_space<vmem>>, %arg4: memref<8x128xf32, #tpu.memory_space<vmem>>) attributes {dimension_semantics = [], scalar_prefetch = 0 : i64, scratch_operands = 0 : i64, tpu.core_type = #tpu.core_type<tc>} {
    %c0 = arith.constant 0 : index
    %c0_0 = arith.constant 0 : index
    %0 = vector.load %arg0[%c0, %c0_0] : memref<8x32xf32, #tpu.memory_space<vmem>>, vector<8x32xf32>
    %c0_1 = arith.constant 0 : index
    %c0_2 = arith.constant 0 : index
    %1 = vector.load %arg1[%c0_1, %c0_2] : memref<8x32xf32, #tpu.memory_space<vmem>>, vector<8x32xf32>
    %c0_3 = arith.constant 0 : index
    %c0_4 = arith.constant 0 : index
    %2 = vector.load %arg2[%c0_3, %c0_4] : memref<33x1536xf32, #tpu.memory_space<vmem>>, vector<32x768xf32>
    %c0_5 = arith.constant 0 : index
    %c768 = arith.constant 768 : index
    %3 = vector.load %arg2[%c0_5, %c768] : memref<33x1536xf32, #tpu.memory_space<vmem>>, vector<32x768xf32>
    %c32 = arith.constant 32 : index
    %c0_6 = arith.constant 0 : index
    %4 = vector.load %arg2[%c32, %c0_6] : memref<33x1536xf32, #tpu.memory_space<vmem>>, vector<1x768xf32>
    %c32_7 = arith.constant 32 : index
    %c768_8 = arith.constant 768 : index
    %5 = vector.load %arg2[%c32_7, %c768_8] : memref<33x1536xf32, #tpu.memory_space<vmem>>, vector<1x768xf32>
    %cst = arith.constant dense<0.000000e+00> : vector<8x768xf32>
    %6 = tpu.matmul %0, %2, %cst {dimension_numbers = #tpu.dot_dimension_numbers<[1], [0], [0], [1], [0, 0, 1, 1], [], []>} : vector<8x32xf32>, vector<32x768xf32>, vector<8x768xf32> -> vector<8x768xf32>
    %7 = vector.broadcast %4 : vector<1x768xf32> to vector<8x768xf32>
    %8 = arith.addf %6, %7 : vector<8x768xf32>
    %cst_9 = arith.constant dense<0.000000e+00> : vector<8x768xf32>
    %9 = tpu.matmul %1, %3, %cst_9 {dimension_numbers = #tpu.dot_dimension_numbers<[1], [0], [0], [1], [0, 0, 1, 1], [], []>} : vector<8x32xf32>, vector<32x768xf32>, vector<8x768xf32> -> vector<8x768xf32>
    %10 = vector.broadcast %5 : vector<1x768xf32> to vector<8x768xf32>
    %11 = arith.addf %9, %10 : vector<8x768xf32>
    %12 = arith.mulf %8, %11 : vector<8x768xf32>
    %13 = vector.extract_strided_slice %12 {offsets = [0, 0], sizes = [8, 128], strides = [1, 1]} : vector<8x768xf32> to vector<8x128xf32>
    %14 = vector.extract_strided_slice %12 {offsets = [0, 128], sizes = [8, 128], strides = [1, 1]} : vector<8x768xf32> to vector<8x128xf32>
    %15 = arith.addf %13, %14 : vector<8x128xf32>
    %16 = vector.extract_strided_slice %12 {offsets = [0, 256], sizes = [8, 128], strides = [1, 1]} : vector<8x768xf32> to vector<8x128xf32>
    %17 = arith.addf %15, %16 : vector<8x128xf32>
    %18 = vector.extract_strided_slice %12 {offsets = [0, 384], sizes = [8, 128], strides = [1, 1]} : vector<8x768xf32> to vector<8x128xf32>
    %19 = arith.addf %17, %18 : vector<8x128xf32>
    %20 = vector.extract_strided_slice %12 {offsets = [0, 512], sizes = [8, 128], strides = [1, 1]} : vector<8x768xf32> to vector<8x128xf32>
    %21 = arith.addf %19, %20 : vector<8x128xf32>
    %22 = vector.extract_strided_slice %12 {offsets = [0, 640], sizes = [8, 128], strides = [1, 1]} : vector<8x768xf32> to vector<8x128xf32>
    %23 = arith.addf %21, %22 : vector<8x128xf32>
    %24 = vector.extract_strided_slice %23 {offsets = [0, 0], sizes = [8, 64], strides = [1, 1]} : vector<8x128xf32> to vector<8x64xf32>
    %25 = vector.extract_strided_slice %23 {offsets = [0, 64], sizes = [8, 64], strides = [1, 1]} : vector<8x128xf32> to vector<8x64xf32>
    %26 = arith.addf %24, %25 : vector<8x64xf32>
    %c0_10 = arith.constant 0 : index
    %c0_11 = arith.constant 0 : index
    %27 = vector.load %arg3[%c0_10, %c0_11] : memref<65x128xf32, #tpu.memory_space<vmem>>, vector<64x128xf32>
    %c64 = arith.constant 64 : index
    %c0_12 = arith.constant 0 : index
    %28 = vector.load %arg3[%c64, %c0_12] : memref<65x128xf32, #tpu.memory_space<vmem>>, vector<1x128xf32>
    %cst_13 = arith.constant 0.000000e+00 : f32
    %29 = vector.broadcast %cst_13 : f32 to vector<8x64xf32>
    %30 = arith.maximumf %26, %29 : vector<8x64xf32>
    %31 = math.sqrt %30 : vector<8x64xf32>
    %cst_14 = arith.constant 0.000000e+00 : f32
    %32 = vector.broadcast %cst_14 : f32 to vector<8x64xf32>
    %33 = arith.subf %32, %26 : vector<8x64xf32>
    %cst_15 = arith.constant 0.000000e+00 : f32
    %34 = vector.broadcast %cst_15 : f32 to vector<8x64xf32>
    %35 = arith.maximumf %33, %34 : vector<8x64xf32>
    %36 = math.sqrt %35 : vector<8x64xf32>
    %37 = arith.subf %31, %36 : vector<8x64xf32>
    %38 = arith.mulf %37, %37 : vector<8x64xf32>
    %cst_16 = arith.constant dense<0.000000e+00> : vector<8xf32>
    %39 = vector.multi_reduction <add>, %38, %cst_16 [1] : vector<8x64xf32> to vector<8xf32>
    %40 = vector.shape_cast %39 : vector<8xf32> to vector<8x1xf32>
    %cst_17 = arith.constant 1.000000e-24 : f32
    %41 = vector.broadcast %cst_17 : f32 to vector<8x1xf32>
    %42 = arith.maximumf %40, %41 : vector<8x1xf32>
    %43 = math.rsqrt %42 : vector<8x1xf32>
    %44 = vector.broadcast %43 : vector<8x1xf32> to vector<8x64xf32>
    %45 = arith.mulf %37, %44 : vector<8x64xf32>
    %cst_18 = arith.constant dense<0.000000e+00> : vector<8x128xf32>
    %46 = tpu.matmul %45, %27, %cst_18 {dimension_numbers = #tpu.dot_dimension_numbers<[1], [0], [0], [1], [0, 0, 1, 1], [], []>} : vector<8x64xf32>, vector<64x128xf32>, vector<8x128xf32> -> vector<8x128xf32>
    %47 = vector.broadcast %28 : vector<1x128xf32> to vector<8x128xf32>
    %48 = arith.addf %46, %47 : vector<8x128xf32>
    %c0_19 = arith.constant 0 : index
    %c0_20 = arith.constant 0 : index
    %49 = vector.load %arg4[%c0_19, %c0_20] : memref<8x128xf32, #tpu.memory_space<vmem>>, vector<8x128xf32>
    tpu.vector_store %arg4[%c0_19, %c0_20], %48 {strides = array<i32>} : memref<8x128xf32, #tpu.memory_space<vmem>>, vector<8x128xf32>,
    return
  }
}

</mosaic_0001>

<bundles_post_ra>
// kernel: tpu_custom_call.1
= control target key start
LH: loop header
LB: loop body
LE: loop exit
PB: predicated region body
PF: predicated region fallthrough
CT: control target
= control target key end

     0   :  { %9 = vsyncpa [#allocation3], 0  ;;  %s1114_s0 = inlined_call_operand.hbm [shape: f32[8,32], index: 0, kind: input, shape index: {}]   ;;  %s1115_s1 = inlined_call_operand.hbm [shape: f32[8,32], index: 1, kind: input, shape index: {}]   ;;  %s1116_s2 = inlined_call_operand.hbm [shape: f32[33,1536], index: 2, kind: input, shape index: {}]   ;;  %s1117_s3 = inlined_call_operand.hbm [shape: f32[65,128], index: 3, kind: input, shape index: {}]   ;;  %s1118_s4 = inlined_call_operand.hbm [shape: f32[8,128], index: 4, kind: output, shape index: {}]  }
   0x1   :  { %10 = vsyncpa [#allocation6], 0 }
   0x2   :  { %11 = vsyncpa [#allocation9], 0 }
   0x3   :  { %12 = vsyncpa [#allocation4], 0  ;;  %s1001_s15 = smov [#allocation5]   ;;  %s1002_s17 = smov [#allocation2]  }
   0x4   :  { %s29_s16 = sshll.u32 %s1001_s15, 4  ;;  %s19_s18 = sshll.u32 %s1002_s17, 4  ;;  %s30_s16 = int_to_ptr.vmem [resolvable:$true] %s29_s16  ;;  %s20_s18 = int_to_ptr.vmem [resolvable:$true] %s19_s18 }
   0x5   :  { %s883_s21 = scalar_lea.hbm %s1115_s1, 128 }
   0x6   :  { %p884_p0 = scmp.ne.s32.totalorder %s1115_s1, %s883_s21  ;;  %p887_p1 = scmp.lt.u32.totalorder %s883_s21, %s1115_s1 }
   0x8   :  { %p889_p2 = pnand %p887_p1, %p884_p0 }
   0xa   :  { %892 = shalt.err (!%p889_p2)
}
   0xb   :  { %s893_s26 = scalar_lea.vmem %s30_s16, 128  ;;  %p898_p4 = scmp.lt.s32.totalorder %s30_s16, %s30_s16 }
   0xc   :  { %p894_p3 = scmp.ne.s32.totalorder %s30_s16, %s893_s26  ;;  %p899_p5 = scmp.lt.s32.totalorder %s893_s26, %s893_s26 }
   0xe   :  { %p900_p6 = por %p899_p5, %p898_p4 }
  0x10   :  { %p901_p7 = pnand %p900_p6, %p894_p3 }
  0x12   :  { %904 = shalt.err (!%p901_p7)
}
  0x13   :  { %32 = dma.hbm_to_vmem [thread:$0]  %s1115_s1, 128, %s30_s16, [#allocation6]  }
  0x14   :  { %s905_s5 = scalar_lea.hbm %s1114_s0, 128 }
  0x15   :  { %p906_p8 = scmp.ne.s32.totalorder %s1114_s0, %s905_s5  ;;  %p909_p9 = scmp.lt.u32.totalorder %s905_s5, %s1114_s0 }
  0x17   :  { %p911_p10 = pnand %p909_p9, %p906_p8 }
  0x19   :  { %914 = shalt.err (!%p911_p10)
}
  0x1a   :  { %s915_s10 = scalar_lea.vmem %s20_s18, 128  ;;  %p920_p12 = scmp.lt.s32.totalorder %s20_s18, %s20_s18 }
  0x1b   :  { %p916_p11 = scmp.ne.s32.totalorder %s20_s18, %s915_s10  ;;  %p921_p13 = scmp.lt.s32.totalorder %s915_s10, %s915_s10 }
  0x1d   :  { %p922_p0 = por %p921_p13, %p920_p12 }
  0x1f   :  { %p923_p1 = pnand %p922_p0, %p916_p11 }
  0x21   :  { %926 = shalt.err (!%p923_p1)
}
  0x22   :  { %22 = dma.hbm_to_vmem [thread:$0]  %s1114_s0, 128, %s20_s18, [#allocation3]  }
  0x23   :  { %s1003_s12 = smov [#allocation7]   ;;  %s927_s16 = scalar_lea.hbm %s1116_s2, 7680 }
  0x24   :  { %s38_s13 = sshll.u32 %s1003_s12, 4  ;;  %p928_p2 = scmp.ne.s32.totalorder %s1116_s2, %s927_s16  ;;  %s39_s13 = int_to_ptr.vmem [resolvable:$true] %s38_s13 }
  0x25   :  { %p931_p3 = scmp.lt.u32.totalorder %s927_s16, %s1116_s2 }
  0x27   :  { %p933_p4 = pnand %p931_p3, %p928_p2 }
  0x29   :  { %936 = shalt.err (!%p933_p4)
}
  0x2a   :  { %s937_s22 = scalar_lea.vmem %s39_s13, 7680  ;;  %p942_p6 = scmp.lt.s32.totalorder %s39_s13, %s39_s13 }
  0x2b   :  { %p938_p5 = scmp.ne.s32.totalorder %s39_s13, %s937_s22  ;;  %p943_p7 = scmp.lt.s32.totalorder %s937_s22, %s937_s22 }
  0x2d   :  { %p944_p8 = por %p943_p7, %p942_p6 }
  0x2f   :  { %p945_p9 = pnand %p944_p8, %p938_p5 }
  0x31   :  { %948 = shalt.err (!%p945_p9)
}
  0x32   :  { %s1004_s0 = smov 1536   ;;  %s1005_s18 = smov 96  }
  0x33   :  { %44 = dma.hbm_to_vmem [thread:$0]  %s1116_s2, 7680, %s39_s13, [#allocation6], %s1004_s0, %s1004_s0, %s1005_s18  }
  0x34   :  { %s1006_s25 = smov [#allocation8]   ;;  %s949_s29 = scalar_lea.hbm %s1117_s3, 1152 }
  0x35   :  { %s50_s26 = sshll.u32 %s1006_s25, 4  ;;  %p950_p10 = scmp.ne.s32.totalorder %s1117_s3, %s949_s29  ;;  %s51_s26 = int_to_ptr.vmem [resolvable:$true] %s50_s26 }
  0x36   :  { %p953_p11 = scmp.lt.u32.totalorder %s949_s29, %s1117_s3 }
  0x38   :  { %p955_p12 = pnand %p953_p11, %p950_p10 }
  0x3a   :  { %958 = shalt.err (!%p955_p12)
}
  0x3b   :  { %s959_s8 = scalar_lea.vmem %s51_s26, 1152  ;;  %p964_p0 = scmp.lt.s32.totalorder %s51_s26, %s51_s26 }
  0x3c   :  { %p960_p13 = scmp.ne.s32.totalorder %s51_s26, %s959_s8  ;;  %p965_p1 = scmp.lt.s32.totalorder %s959_s8, %s959_s8 }
  0x3e   :  { %p966_p2 = por %p965_p1, %p964_p0 }
  0x40   :  { %p967_p3 = pnand %p966_p2, %p960_p13 }
  0x42   :  { %970 = shalt.err (!%p967_p3)
}
  0x43   :  { %s1007_s2 = smov 128   ;;  %s1008_s9 = smov 8  }
  0x44   :  { %56 = dma.hbm_to_vmem [thread:$0]  %s1117_s3, 1152, %s51_s26, [#allocation9], %s1007_s2, %s1007_s2, %s1008_s9  }
  0x45   :  { %993 = dma.done.wait [#allocation3], 128  }
  0x46   :  { %994 = vsyncadd [#allocation3], 4294967168 }
  0x47   :  { %995 = dma.done.wait [#allocation6], 7808  }
  0x48   :  { %996 = vsyncadd [#allocation6], 4294959488 }
  0x49   :  { %997 = dma.done.wait [#allocation9], 1152  }
  0x4a   :  { %998 = vsyncadd [#allocation9], 4294966144  ;;  %v1009_v0 = vmov 0.0   ;;  %v72_v1 = vld [vmem:[#allocation7 + $0x8] sm:$0xff]  ;;  %v71_v6 = vld [vmem:[#allocation7] sm:$0xff]  ;;  %vm158_vm0 = vcmask 261120  }
  0x4b   :  { %226 = vmatprep.mubr.f32.mxu1 %v1009_v0  ;;  %368 = vmatprep.mubr.f32.mxu0 %v1009_v0  ;;  %v78_v2 = vld [vmem:[#allocation7 + $0x68] sm:$0xff]  ;;  %v77_v7 = vld [vmem:[#allocation7 + $0x60] sm:$0xff]  ;;  %v74_v24 = vld [vmem:[#allocation7 + $0x18] sm:$0xff]  ;;  %s1010_s3 = smov 64   ;;  %vm666_vm5 = vcmask 523264   ;;  %vm1012_vm6 = vmmov 0  }
  0x4c   :  { %v76_v3 = vld [vmem:[#allocation7 + $0x28] sm:$0xff]  ;;  %v804_v4 = vpack.c.bf16 %v78_v2, %v72_v1  ;;  %v806_v9 = vpack.c.bf16 %v77_v7, %v71_v6  ;;  %v75_v10 = vld [vmem:[#allocation7 + $0x20] sm:$0xff]  ;;  %v69_v26 = vld [vmem:[#allocation2] sm:$0xff]  ;;  %s1013_s11 = smov [#allocation10]  }
  0x4d   :  { %v82_v5 = vld [vmem:[#allocation7 + $0x88] sm:$0xff]  ;;  %v81_v11 = vld [vmem:[#allocation7 + $0x80] sm:$0xff]  ;;  %v80_v27 = vld [vmem:[#allocation7 + $0x78] sm:$0xff]  ;;  %s757_s12 = sshll.u32 %s1013_s11, 4  ;;  %s758_s12 = int_to_ptr.vmem [resolvable:$true] %s757_s12 }
  0x4e   :  { %v820_v8 = vpack.c.bf16 %v82_v5, %v76_v3  ;;  %v84_v12 = vld [vmem:[#allocation7 + $0xc8] sm:$0xff]  ;;  %805 = vmatprep.subr.bf16.mxu1 %v804_v4  ;;  %v822_v13 = vpack.c.bf16 %v81_v11, %v75_v10  ;;  %v83_v19 = vld [vmem:[#allocation7 + $0xc0] sm:$0xff]  ;;  %v812_v30 = vpack.c.bf16 %v80_v27, %v74_v24  ;;  %v73_v32 = vld [vmem:[#allocation7 + $0x10] sm:$0xff]  ;;  %s971_s13 = scalar_lea.vmem %s758_s12, 128  ;;  %p976_p5 = scmp.lt.s32.totalorder %s758_s12, %s758_s12 }
  0x4f   :  { %v90_v14 = vld [vmem:[#allocation7 + $0x128] sm:$0xff]  ;;  %807 = vmatpush1.bf16.msra.mxu1 %v806_v9  ;;  %v89_v20 = vld [vmem:[#allocation7 + $0x120] sm:$0xff]  ;;  %v79_v33 = vld [vmem:[#allocation7 + $0x70] sm:$0xff]  ;;  %p972_p4 = scmp.ne.s32.totalorder %s758_s12, %s971_s13  ;;  %p977_p6 = scmp.lt.s32.totalorder %s971_s13, %s971_s13 }
  0x50   :  { %v88_v15 = vld [vmem:[#allocation7 + $0xe8] sm:$0xff]  ;;  %821 = vmatprep.subr.bf16.mxu0 %v820_v8  ;;  %v808_v17 = vpack.c.bf16 %v90_v14, %v84_v12  ;;  %v87_v21 = vld [vmem:[#allocation7 + $0xe0] sm:$0xff]  ;;  %v810_v22 = vpack.c.bf16 %v89_v20, %v83_v19  ;;  %v814_v35 = vpack.c.bf16 %v79_v33, %v73_v32  ;;  %v86_v37 = vld [vmem:[#allocation7 + $0xd8] sm:$0xff]  ;;  %v128_v12 = vlaneseq }
  0x51   :  { %v94_v16 = vld [vmem:[#allocation7 + $0x148] sm:$0xff]  ;;  %823 = vmatpush1.bf16.msra.mxu0 %v822_v13  ;;  %v93_v23 = vld [vmem:[#allocation7 + $0x140] sm:$0xff]  ;;  %v92_v38 = vld [vmem:[#allocation7 + $0x138] sm:$0xff]  ;;  %p978_p7 = por %p977_p6, %p976_p5 }
  0x52   :  { %v824_v18 = vpack.c.bf16 %v94_v16, %v88_v15  ;;  %809 = vmatprep.subr.bf16.mxu1 %v808_v17  ;;  %v826_v25 = vpack.c.bf16 %v93_v23, %v87_v21  ;;  %v98_v28 = vld [vmem:[#allocation7 + $0x48] sm:$0xff]  ;;  %v97_v34 = vld [vmem:[#allocation7 + $0x40] sm:$0xff]  ;;  %v816_v40 = vpack.c.bf16 %v92_v38, %v86_v37  ;;  %v85_v43 = vld [vmem:[#allocation7 + $0xd0] sm:$0xff]  ;;  %v129_v14 = vshrl.u32 %v128_v12, 7 }
  0x53   :  { %v104_v29 = vld [vmem:[#allocation7 + $0xa8] sm:$0xff]  ;;  %811 = vmatpush1.bf16.msra.mxu1 %v810_v22  ;;  %v103_v36 = vld [vmem:[#allocation7 + $0xa0] sm:$0xff]  ;;  %v91_v45 = vld [vmem:[#allocation7 + $0x130] sm:$0xff]  ;;  %p979_p8 = pnand %p978_p7, %p972_p4 }
  0x54   :  { %825 = vmatprep.subr.bf16.mxu0 %v824_v18  ;;  %v836_v31 = vpack.c.bf16 %v104_v29, %v98_v28  ;;  %813 = vmatprep.subr.bf16.mxu1 %v812_v30  ;;  %v838_v39 = vpack.c.bf16 %v103_v36, %v97_v34  ;;  %v110_v41 = vld [vmem:[#allocation7 + $0x108] sm:$0xff]  ;;  %v109_v46 = vld [vmem:[#allocation7 + $0x100] sm:$0xff]  ;;  %v96_v48 = vld [vmem:[#allocation7 + $0x38] sm:$0xff]  ;;  %v818_v50 = vpack.c.bf16 %v91_v45, %v85_v43  ;;  %v138_v21 = vsub.s32 2, %v129_v14 }
  0x55   :  { %827 = vmatpush1.bf16.msra.mxu0 %v826_v25  ;;  %v116_v42 = vld [vmem:[#allocation7 + $0x168] sm:$0xff]  ;;  %v115_v47 = vld [vmem:[#allocation7 + $0x160] sm:$0xff]  ;;  %v102_v49 = vld [vmem:[#allocation7 + $0x98] sm:$0xff]  ;;  %v142_v24 = vsub.s32 3, %v129_v14 }
  0x56   :  { %837 = vmatprep.subr.bf16.mxu0 %v836_v31  ;;  %v840_v44 = vpack.c.bf16 %v116_v42, %v110_v41  ;;  %768 = vmatmul.mubr.msk.f32.vlgmr.msra.gmra.mrb[0].mxu1 %vm158_vm0, %v69_v26  ;;  %v842_v51 = vpack.c.bf16 %v115_v47, %v109_v46  ;;  %v828_v52 = vpack.c.bf16 %v102_v49, %v96_v48  ;;  %v95_v53 = vld [vmem:[#allocation7 + $0x30] sm:$0xff]  ;;  %v108_v55 = vld [vmem:[#allocation7 + $0xf8] sm:$0xff]  ;;  %v121_v17 = vld [vmem:[#allocation7 + $0x180] ss:$8 sm:$0x30]  ;;  %v130_v31 = vsub.s32 0, %v129_v14 }
  0x57   :  { %815 = vmatpush1.bf16.msra.mxu1 %v814_v35  ;;  %v101_v54 = vld [vmem:[#allocation7 + $0x90] sm:$0xff]  ;;  %297 = vmatprep.mubr.f32.mxu1 %v1009_v0  ;;  %v114_v56 = vld [vmem:[#allocation7 + $0x158] sm:$0xff]  ;;  %v134_v35 = vsub.s32 1, %v129_v14  ;;  %v146_v48 = vsub.s32 4, %v129_v14 }
  0x58   :  { %770 = vmatmul.mubr.msk.f32.vlgmr.msra.gmra.mrb[0].mxu0 %vm158_vm0, %v69_v26  ;;  %817 = vmatprep.subr.bf16.mxu1 %v816_v40  ;;  %v830_v57 = vpack.c.bf16 %v101_v54, %v95_v53  ;;  %v70_v58 = vld [vmem:[#allocation5] sm:$0xff]  ;;  %v832_v59 = vpack.c.bf16 %v114_v56, %v108_v55  ;;  %v107_v60 = vld [vmem:[#allocation7 + $0xf0] sm:$0xff] }
  0x59   :  { %839 = vmatpush1.bf16.msra.mxu0 %v838_v39  ;;  %544 = vmatprep.mubr.f32.mxu0 %v1009_v0  ;;  %v113_v61 = vld [vmem:[#allocation7 + $0x150] sm:$0xff]  ;;  %v100_v62 = vld [vmem:[#allocation7 + $0x58] sm:$0xff] }
  0x5a   :  { %841 = vmatprep.subr.bf16.mxu0 %v840_v44  ;;  %v106_v63 = vld [vmem:[#allocation7 + $0xb8] sm:$0xff]  ;;  %v834_v1 = vpack.c.bf16 %v113_v61, %v107_v60  ;;  %v99_v3 = vld [vmem:[#allocation7 + $0x50] sm:$0xff] }
  0x5b   :  { %819 = vmatpush1.bf16.msra.mxu1 %v818_v50  ;;  %v844_v2 = vpack.c.bf16 %v106_v63, %v100_v62  ;;  %v105_v4 = vld [vmem:[#allocation7 + $0xb0] sm:$0xff]  ;;  %v112_v5 = vld [vmem:[#allocation7 + $0x118] sm:$0xff] }
  0x5c   :  { %829 = vmatprep.subr.bf16.mxu1 %v828_v52  ;;  %v118_v6 = vld [vmem:[#allocation7 + $0x178] sm:$0xff]  ;;  %v846_v7 = vpack.c.bf16 %v105_v4, %v99_v3  ;;  %v111_v9 = vld [vmem:[#allocation7 + $0x110] sm:$0xff]  ;;  %v150_v52 = vsub.s32 5, %v129_v14 }
  0x5d   :  { %843 = vmatpush1.bf16.msra.mxu0 %v842_v51  ;;  %v848_v8 = vpack.c.bf16 %v118_v6, %v112_v5  ;;  %v117_v10 = vld [vmem:[#allocation7 + $0x170] sm:$0xff] }
  0x5e   :  { %769 = vmatmul.mubr.msk.f32.vlgmr.msra.gmra.mrb[2].mxu1 %vm158_vm0, %v69_v26  ;;  %v850_v11 = vpack.c.bf16 %v117_v10, %v111_v9  ;;  %v120_v13 = vld [vmem:[#allocation7 + $0x180] ss:$8 sm:$0xf]  ;;  %v1011_v10 = vmov 0.0|0.0  }
  0x5f   :  { %831 = vmatpush1.bf16.msra.mxu1 %v830_v57  ;;  %473 = vmatprep.mubr.f32.mxu1 %v1009_v0  ;;  %v124_v15 = vld [vmem:[#allocation7 + $0x1b0] ss:$8 sm:$0xf]  ;;  %v122_v25 = vor.u32 %v121_v17, %v120_v13 }
  0x60   :  { %772 = vmatmul.mubr.msk.f32.vlgmr.msra.gmra.mrb[2].mxu0 %vm158_vm0, %v70_v58  ;;  %833 = vmatprep.subr.bf16.mxu1 %v832_v59  ;;  %v125_v16 = vld [vmem:[#allocation7 + $0x1b0] ss:$8 sm:$0x30] }
  0x61   :  { %v126_v23 = vor.u32 %v125_v16, %v124_v15  ;;  %v139_v26 = vrot.slane %v122_v25, %v138_v21  ;;  %v143_v28 = vrot.slane %v122_v25, %v142_v24  ;;  %v131_v41 = vrot.slane %v122_v25, %v130_v31  ;;  %852 = vmatprep.subr.bf16.mxu0 %v1011_v10 }
  0x62   :  { %v135_v44 = vrot.slane %v122_v25, %v134_v35  ;;  %v147_v56 = vrot.slane %v122_v25, %v146_v48  ;;  %801 = vmatprep.mubr.msk.f32.mxu0 %vm1012_vm6, %v1009_v0 }
  0x63   :  { %835 = vmatpush1.bf16.msra.mxu1 %v834_v1  ;;  %v387_v27 = vrot.slane %v126_v23, %v138_v21  ;;  %v391_v29 = vrot.slane %v126_v23, %v142_v24  ;;  %v379_v43 = vrot.slane %v126_v23, %v130_v31  ;;  %v383_v45 = vrot.slane %v126_v23, %v134_v35  ;;  %v642_v35 = vld [vmem:[#allocation8 + $0x20] sm:$0xff] }
  0x64   :  { %845 = vmatprep.subr.bf16.mxu1 %v844_v2  ;;  %v395_v57 = vrot.slane %v126_v23, %v146_v48  ;;  %v399_v60 = vrot.slane %v126_v23, %v150_v52 }
  0x66   :  { %771 = vmatmul.mubr.msk.f32.vlgmr.msra.gmra.mrb[4].mxu1 %vm158_vm0, %v70_v58 }
  0x67   :  { %847 = vmatpush1.bf16.msra.mxu1 %v846_v7  ;;  %615 = vmatprep.mubr.f32.mxu1 %v1009_v0 }
  0x68   :  { %849 = vmatprep.subr.bf16.mxu1 %v848_v8 }
  0x6b   :  { %851 = vmatpush1.bf16.msra.mxu1 %v850_v11 }
  0x6e   :  { %773 = vmatmul.mubr.msk.f32.vlgmr.msra.gmra.mrb[6].mxu1 %vm158_vm0, %v70_v58  ;;  %v151_v58 = vrot.slane %v122_v25, %v150_v52 }
 0x129   :  { %v228_v18 = vpop.f32.mrb[0].mxu1 }
 0x12a   :  { %v230_v19 = vpop.f32.mrb[1].mxu1  ;;  %v229_v47 = vadd.f32 %v228_v18, %v131_v41 }
 0x12b   :  { %v370_v20 = vpop.f32.mrb[0].mxu0  ;;  %v231_v51 = vadd.f32 %v230_v19, %v135_v44 }
 0x12c   :  { %v372_v22 = vpop.f32.mrb[1].mxu0  ;;  %v371_v63 = vadd.f32 %v370_v20, %v147_v56 }
 0x12d   :  { %v373_v3 = vadd.f32 %v372_v22, %v151_v58 }
 0x131   :  { %v299_v30 = vpop.f32.mrb[2].mxu1 }
 0x132   :  { %v300_v32 = vadd.f32 %v299_v30, %v139_v26  ;;  %v301_v34 = vpop.f32.mrb[3].mxu1  ;;  %v639_v30 = vld [vmem:[#allocation8 + $0x8] sm:$0xff] }
 0x133   :  { %v546_v33 = vpop.f32.mrb[2].mxu0  ;;  %v302_v37 = vadd.f32 %v301_v34, %v143_v28 }
 0x134   :  { %v547_v36 = vadd.f32 %v546_v33, %v387_v27  ;;  %v548_v38 = vpop.f32.mrb[3].mxu0  ;;  %v641_v33 = vld [vmem:[#allocation8 + $0x18] sm:$0xff] }
 0x135   :  { %v549_v39 = vadd.f32 %v548_v38, %v391_v29  ;;  %v638_v29 = vld [vmem:[#allocation8] sm:$0xff]  ;;  %v644_v38 = vld [vmem:[#allocation8 + $0x30] sm:$0xff] }
 0x136   :  { %v624_v40 = vmul.f32 %v547_v36, %v300_v32  ;;  %v853_v31 = vpack.c.bf16 %v639_v30, %v638_v29  ;;  %v640_v32 = vld [vmem:[#allocation8 + $0x10] sm:$0xff]  ;;  %v643_v36 = vld [vmem:[#allocation8 + $0x28] sm:$0xff] }
 0x137   :  { %v625_v42 = vmul.f32 %v549_v39, %v302_v37  ;;  %v856_v34 = vpack.c.bf16 %v641_v33, %v640_v32  ;;  %v859_v37 = vpack.c.bf16 %v643_v36, %v642_v35  ;;  %v645_v39 = vld [vmem:[#allocation8 + $0x38] sm:$0xff] }
 0x138   :  { %854 = vmatpush3.bf16.msra.mxu0 %v853_v31 }
 0x139   :  { %v475_v46 = vpop.f32.mrb[4].mxu1  ;;  %855 = vmatprep.subr.bf16.mxu0 %v1011_v10 }
 0x13a   :  { %v476_v49 = vadd.f32 %v475_v46, %v379_v43  ;;  %v477_v50 = vpop.f32.mrb[5].mxu1 }
 0x13b   :  { %v478_v53 = vadd.f32 %v477_v50, %v383_v45  ;;  %v774_v45 = vld [vmem:[#allocation8 + $0x40] ss:$0 sm:$0xff] }
 0x13c   :  { %v622_v54 = vmul.f32 %v476_v49, %v229_v47  ;;  %857 = vmatpush3.bf16.msra.mxu0 %v856_v34 }
 0x13d   :  { %v623_v55 = vmul.f32 %v478_v53, %v231_v51  ;;  %858 = vmatprep.subr.bf16.mxu0 %v1011_v10 }
 0x13f   :  { %v628_v59 = vadd.f32 %v623_v55, %v622_v54 }
 0x140   :  { %860 = vmatpush3.bf16.msra.mxu0 %v859_v37 }
 0x141   :  { %v629_v61 = vadd.f32 %v628_v59, %v624_v40  ;;  %v617_v62 = vpop.f32.mrb[6].mxu1  ;;  %861 = vmatprep.subr.bf16.mxu0 %v1011_v10  ;;  %v862_v40 = vpack.c.bf16 %v645_v39, %v644_v38 }
 0x142   :  { %v618_v1 = vadd.f32 %v617_v62, %v395_v57  ;;  %v619_v2 = vpop.f32.mrb[7].mxu1 }
 0x143   :  { %v620_v4 = vadd.f32 %v619_v2, %v399_v60  ;;  %v630_v5 = vadd.f32 %v629_v61, %v625_v42 }
 0x144   :  { %v626_v6 = vmul.f32 %v618_v1, %v371_v63  ;;  %863 = vmatpush3.bf16.msra.mxu0 %v862_v40 }
 0x145   :  { %v627_v7 = vmul.f32 %v620_v4, %v373_v3 }
 0x146   :  { %v631_v8 = vadd.f32 %v630_v5, %v626_v6 }
 0x148   :  { %v632_v9 = vadd.f32 %v631_v8, %v627_v7 }
 0x14a   :  { %634 = vrot.lane.b32.xlu0 %v632_v9, %s1010_s3 }
 0x1bc   :  { %v635_v11 = vpop.permute.xlu0 %634 }
 0x1bd   :  { %v637_v12 = vadd.f32 %v635_v11, %v632_v9 }
 0x1bf   :  { %v647_v13 = vmax.f32 %v637_v12, 0.0  ;;  %v655_v14 = vsub.f32 0.0, %v637_v12 }
 0x1c1   :  { %877 = vrsqrt.f32 %v647_v13  ;;  %v656_v15 = vmax.f32 %v655_v14, 0.0  ;;  %vm650_vm1 = vcmp.eq.f32.partialorder %v647_v13, inf  ;;  %v653_v21 = vand.u32 2147483648, %v647_v13 }
 0x1c2   :  { %vm652_vm3 = vcmp.eq.f32.partialorder %v647_v13, 0.0 }
 0x1c3   :  { %879 = vrsqrt.f32 %v656_v15  ;;  %vm659_vm2 = vcmp.eq.f32.partialorder %v656_v15, inf  ;;  %v662_v22 = vand.u32 2147483648, %v656_v15  ;;  %vm661_vm4 = vcmp.eq.f32.partialorder %v656_v15, 0.0 }
 0x1cb   :  { %v878_v16 = vpop.eup %877 }
 0x1cc   :  { %v649_v17 = vmul.f32 %v878_v16, %v647_v13 }
 0x1cd   :  { %v880_v18 = vpop.eup %879 }
 0x1ce   :  { %v651_v19 = vsel %vm650_vm1, %v647_v13, %v649_v17  ;;  %v658_v20 = vmul.f32 %v880_v18, %v656_v15 }
 0x1cf   :  { %v654_v24 = vsel %vm652_vm3, %v653_v21, %v651_v19 }
 0x1d0   :  { %v660_v23 = vsel %vm659_vm2, %v656_v15, %v658_v20 }
 0x1d1   :  { %v663_v25 = vsel %vm661_vm4, %v662_v22, %v660_v23 }
 0x1d2   :  { %v664_v26 = vsub.f32 %v654_v24, %v663_v25 }
 0x1d4   :  { %v665_v27 = vmul.f32 %v664_v26, %v664_v26 }
 0x1d6   :  { %v667_v28 = vsel %vm666_vm5, %v665_v27, 0.0 }
 0x1d7   :  { %668 = vadd.xlane.f32.xlu0 %v667_v28 }
 0x264   :  { %v669_v41 = vpop.xlane.xlu0 %668 }
 0x265   :  { %v670_v42 = vmax.f32 %v669_v41, 1e-24 }
 0x267   :  { %881 = vrsqrt.f32 %v670_v42 }
 0x271   :  { %v882_v43 = vpop.eup %881 }
 0x272   :  { %v672_v44 = vmul.f32 %v882_v43, %v664_v26 }
 0x274   :  { %802 = vmatmul.mubr.msk.f32.vlgmr.msra.gmra.mrb[4].mxu0 %vm666_vm5, %v672_v44 }
 0x347   :  { %v746_v46 = vpop.f32.mrb[4].mxu0 }
 0x348   :  { %v747_v47 = vadd.f32 %v774_v45, %v746_v46  ;;  %v803_v48 = vpop.f32.mrb[5].mxu0 }
 0x34a   :  { %750 = vst [vmem:[#allocation10] sm:$0xff] %v747_v47 }
 0x34b   :  { %982 = shalt.err (!%p979_p8)
}
 0x34c   :  { %s983_s16 = scalar_lea.hbm %s1118_s4, 128 }
 0x34d   :  { %p984_p9 = scmp.ne.s32.totalorder %s1118_s4, %s983_s16  ;;  %p987_p10 = scmp.lt.u32.totalorder %s983_s16, %s1118_s4 }
 0x34f   :  { %p989_p11 = pnand %p987_p10, %p984_p9 }
 0x351   :  { %992 = shalt.err (!%p989_p11)
}
 0x352   :  { %760 = dma.vmem_to_hbm [thread:$0]  %s758_s12, 128, %s1118_s4, [#allocation4]  }
 0x353   :  { %999 = dma.done.wait [#allocation4], 128  }
 0x354   :  { %1000 = vsyncadd [#allocation4], 4294967168 }
 0x355   :  { %764 = vsyncpa [#allocation3], 1 }
 0x356   :  { %765 = vsyncpa [#allocation6], 1 }
 0x357   :  { %766 = vsyncpa [#allocation9], 1 }
 0x358   :  { %767 = vsyncpa [#allocation4], 1 }

</bundles_post_ra>
